<compile_context>
chip_gen: v5e
topology: v5e:2x2
jax: 0.10.0
libtpu: 0.0.40
codegen_flags: <defaults>
</compile_context>

<pallas_src>
import functools

import jax
import jax.numpy as jnp
from jax.experimental import pallas as pl
from jax.experimental.pallas import tpu as pltpu


class Config:
    # small synthetic config consistent with the module's shape requirements
    n_gene = 16      # number of genes (second-minor dim, multiple of 8)
    d_gene = 128     # per-gene embedding dim (lane dim, multiple of 128)


def mut_encoding_kernel(emb_ref, mut_ref, w_ref, out_ref):
    # emb_ref: (TILE_B, n_gene, d_gene)
    # mut_ref: (TILE_B, n_gene, 1)
    # w_ref:   (1, 1, d_gene)          -- VMEM-resident across the whole grid
    # out[b, g, d] = emb[b, g, d] + mut[b, g] * w[d]
    out_ref[...] = emb_ref[...] + mut_ref[...] * w_ref[...]


def prepare_params(params):
    """One-time weight prep (hoisted out of the per-call forward path).

    PyTorch Linear(1, d_gene, bias=False) stores W as (d_gene, 1); the kernel
    wants it as a lane vector of shape (1, 1, d_gene).
    """
    w = params["W"]                                   # (d_gene, 1)
    return {"w3": w[:, 0].reshape(1, 1, Config.d_gene).astype(jnp.float32)}


@functools.partial(jax.jit, static_argnames=("tile_b",))
def mut_encoding_forward(emb, mut, w3, *, tile_b=256):
    B, G, D = emb.shape
    tile_b = min(tile_b, B)
    mut3 = mut.reshape(B, G, 1)                       # free metadata reshape

    grid = (pl.cdiv(B, tile_b),)                      # batch tiling -> pipelined DMA
    return pl.pallas_call(
        mut_encoding_kernel,
        out_shape=jax.ShapeDtypeStruct((B, G, D), emb.dtype),
        grid=grid,
        in_specs=[
            pl.BlockSpec((tile_b, G, D), lambda i: (i, 0, 0)),   # emb tile
            pl.BlockSpec((tile_b, G, 1), lambda i: (i, 0, 0)),   # mut tile
            pl.BlockSpec((1, 1, D),      lambda i: (0, 0, 0)),   # weight, constant block
        ],
        out_specs=pl.BlockSpec((tile_b, G, D), lambda i: (i, 0, 0)),
        compiler_params=pltpu.CompilerParams(
            # batch tiles are independent -> shard across both TCs on v7x
            dimension_semantics=("parallel",)),
    )(emb, mut3, w3)


def mut_encoding_reference(emb, mut, params):
    """Pure-JAX reference mirroring the PyTorch forward exactly."""
    # Linear(1, d_gene): (B, G, 1) @ W.T where W is (d_gene, 1)
    enc = mut[..., None] @ params["W"].T              # (B, G, d_gene)
    return emb + enc


if __name__ == "__main__":
    key = jax.random.PRNGKey(0)
    k_e, k_m, k_w = jax.random.split(key, 3)

    B = 16
    emb = jax.random.normal(k_e, (B, Config.n_gene, Config.d_gene), jnp.float32)
    mut = jax.random.normal(k_m, (B, Config.n_gene), jnp.float32)
    params = {"W": 0.1 * jax.random.normal(k_w, (Config.d_gene, 1), jnp.float32)}

    prepped = prepare_params(params)                  # one-time weight prep
    # tile_b=8 so the demo actually exercises a multi-step pipelined grid.
    out = mut_encoding_forward(emb, mut, prepped["w3"], tile_b=8)
    out = jax.block_until_ready(out)

    ref = mut_encoding_reference(emb, mut, params)
    assert out.shape == (B, Config.n_gene, Config.d_gene)
    assert jnp.allclose(out, ref, atol=1e-6, rtol=1e-6), "mismatch vs reference"

    print("KERNEL_OK")
</pallas_src>

<mosaic_0001>
module attributes {stable_mosaic.version = 11 : i64} {
  func.func @mut_encoding_kernel(%arg0: i32, %arg1: memref<8x16x128xf32, #tpu.memory_space<vmem>>, %arg2: memref<8x16x1xf32, #tpu.memory_space<vmem>>, %arg3: memref<1x1x128xf32, #tpu.memory_space<vmem>>, %arg4: memref<8x16x128xf32, #tpu.memory_space<vmem>>) attributes {dimension_semantics = [#tpu.dimension_semantics<parallel>], iteration_bounds = array<i64: 2>, scalar_prefetch = 0 : i64, scratch_operands = 0 : i64, tpu.core_type = #tpu.core_type<tc>, window_params = [{transform_indices = @transform_0, window_bounds = array<i64: 8, 16, 128>}, {transform_indices = @transform_1, window_bounds = array<i64: 8, 16, 1>}, {pipeline_mode = #tpu.pipeline_mode<synchronous>, transform_indices = @transform_2, window_bounds = array<i64: 1, 1, 128>}, {transform_indices = @transform_3, window_bounds = array<i64: 8, 16, 128>}]} {
    %c0 = arith.constant 0 : index
    %c0_0 = arith.constant 0 : index
    %c0_1 = arith.constant 0 : index
    %0 = vector.load %arg1[%c0, %c0_0, %c0_1] : memref<8x16x128xf32, #tpu.memory_space<vmem>>, vector<8x16x128xf32>
    %c0_2 = arith.constant 0 : index
    %c0_3 = arith.constant 0 : index
    %c0_4 = arith.constant 0 : index
    %1 = vector.load %arg2[%c0_2, %c0_3, %c0_4] : memref<8x16x1xf32, #tpu.memory_space<vmem>>, vector<8x16x1xf32>
    %c0_5 = arith.constant 0 : index
    %c0_6 = arith.constant 0 : index
    %c0_7 = arith.constant 0 : index
    %2 = vector.load %arg3[%c0_5, %c0_6, %c0_7] : memref<1x1x128xf32, #tpu.memory_space<vmem>>, vector<1x1x128xf32>
    %3 = vector.broadcast %1 : vector<8x16x1xf32> to vector<8x16x128xf32>
    %4 = vector.broadcast %2 : vector<1x1x128xf32> to vector<8x16x128xf32>
    %5 = arith.mulf %3, %4 : vector<8x16x128xf32>
    %6 = arith.addf %0, %5 : vector<8x16x128xf32>
    %c0_8 = arith.constant 0 : index
    %c0_9 = arith.constant 0 : index
    %c0_10 = arith.constant 0 : index
    %7 = vector.load %arg4[%c0_8, %c0_9, %c0_10] : memref<8x16x128xf32, #tpu.memory_space<vmem>>, vector<8x16x128xf32>
    tpu.vector_store %arg4[%c0_8, %c0_9, %c0_10], %6 {strides = array<i32>} : memref<8x16x128xf32, #tpu.memory_space<vmem>>, vector<8x16x128xf32>,
    return
  }
  func.func @transform_0(%arg0: i32) -> (i32, i32, i32) {
    %c0_i32 = arith.constant 0 : i32
    %c0_i32_0 = arith.constant 0 : i32
    %c0_i32_1 = arith.constant 0 : i32
    return %arg0, %c0_i32, %c0_i32_0 : i32, i32, i32
  }
  func.func @transform_1(%arg0: i32) -> (i32, i32, i32) {
    %c0_i32 = arith.constant 0 : i32
    %c0_i32_0 = arith.constant 0 : i32
    %c0_i32_1 = arith.constant 0 : i32
    return %arg0, %c0_i32, %c0_i32_0 : i32, i32, i32
  }
  func.func @transform_2(%arg0: i32) -> (i32, i32, i32) {
    %c0_i32 = arith.constant 0 : i32
    %c0_i32_0 = arith.constant 0 : i32
    %c0_i32_1 = arith.constant 0 : i32
    %c0_i32_2 = arith.constant 0 : i32
    return %c0_i32, %c0_i32_0, %c0_i32_1 : i32, i32, i32
  }
  func.func @transform_3(%arg0: i32) -> (i32, i32, i32) {
    %c0_i32 = arith.constant 0 : i32
    %c0_i32_0 = arith.constant 0 : i32
    %c0_i32_1 = arith.constant 0 : i32
    return %arg0, %c0_i32, %c0_i32_0 : i32, i32, i32
  }
}

</mosaic_0001>

<bundles_post_ra>
// kernel: mut_encoding_forward.1
= control target key start
LH: loop header
LB: loop body
LE: loop exit
PB: predicated region body
PF: predicated region fallthrough
CT: control target
= control target key end

     0   :  { %8 = vsyncpa [#allocation3], 0  ;;  %s783_s0 = inlined_call_operand.vmem [shape: f32[16,16,128], index: 0, kind: input, shape index: {}]   ;;  %s784_s1 = inlined_call_operand.vmem [shape: f32[16,16,1], index: 1, kind: input, shape index: {}]   ;;  %s785_s2 = inlined_call_operand.vmem [shape: f32[1,1,128], index: 2, kind: input, shape index: {}]   ;;  %s786_s3 = inlined_call_operand.hbm [shape: f32[16,16,128], index: 3, kind: output, shape index: {}]  }
   0x1   :  { %10 = vsyncpa [#allocation3 + $0x1], 0  ;;  %s609_s12 = smov 0   ;;  %s611_s13 = smov 0  }
   0x2   :  { %s613_s14 = smov 0   ;;  %s615_s15 = smov 0  }
   0x3 LB: > { %s630_s16 = sadd.s32 4294967295, %s584_s15   ;;  %s455_s17 = sadd.s32 4294967294, %s584_s15   ;;  %s584_s15 = sphi %s615_s15, %s792_s15   ;;  %s580_s14 = sphi %s613_s14, %s791_s14   ;;  %s576_s13 = sphi %s611_s13, %s790_s13   ;;  %s572_s12 = sphi %s609_s12, %s789_s12  }
   0x4   : > { %s634_s18 = sadd.s32 1, %s584_s15   ;;  %s96_s19 = sadd.s32 1, %s580_s14 }
   0x5   : > { %s93_s20 = ssub.s32 %s584_s15, %s634_s18  ;;  %p106_p0 = scmp.ne.s32.totalorder %s580_s14, %s576_s13 }
   0x6   : > { %p94_p1 = scmp.eq.s32.totalorder %s93_s20, 0  ;;  %p107_p2 = scmp.eq.s32.totalorder %s630_s16, 1 }
   0x7   : > { %p112_p3 = scmp.ne.s32.totalorder %s576_s13, %s572_s12  ;;  %p113_p4 = scmp.eq.s32.totalorder %s455_s17, 1 }
   0x8   : > { %s645_s21 = scalar_select %p94_p1, %s580_s14, %s96_s19  }
   0x9   : > { %p647_p5 = por %p107_p2, %p106_p0  ;;  %p651_p6 = por %p113_p4, %p112_p3 }
   0xa   : > { %p458_p7 = scmp.ge.s32.totalorder %s584_s15, 1  ;;  %p154_p8 = scmp.lt.s32.totalorder %s584_s15, 3 }
   0xc   : > { %p155_p9 = pnand %p458_p7, %p154_p8 }
   0xd   : > { %s460_s24 = sshll.u32 (!%p155_p9), %s630_s16, 3  ;;  %s182_s29 = sand.u32 (!%p155_p9), 1, %s576_s13  }
   0xe   : > { %158 = sbr.rel (%p155_p9) target bundleno = 187 (0xbb), region = 32  ;;  %p186_p10 = scmp.lt.s32.totalorder (!%p155_p9), %s460_s24, 15 }
   0xf   : > { %s459_s8 = sshll.u32 (!%p155_p9), %s182_s29, 7  ;;  %s475_s10 = sshll.u32 (!%p155_p9), %s630_s16, 7 }
  0x10   : > { %s701_s9 = scalar_lea.vmem (!%p155_p9), [#allocation2], %s459_s8  ;;  %s377_s19 = scalar_lea.hbm (!%p155_p9), %s786_s3, %s475_s10 }
  0x11   : > { %s378_s20 = sshll.u32 (!%p155_p9), %s701_s9, 4  ;;  %s365_s16 = scalar_lea.sflag (!%p155_p9), [#allocation3], %s182_s29  ;;  %s379_s20 = int_to_ptr.vmem [resolvable:$true] %s378_s20 }
  0x12   : > { %s542_s30 = scalar_lea.hbm (!%p155_p9), %s786_s3, 256 }
  0x13   : > { %v586_v0 = vmov 0   ;;  %s794_s24 = smov (!%p186_p10, %s460_s24), 15  ;;  %v695_v17 = vld [vmem:[%s785_s2] ss:$0 sm:$0xff] }
  0x14   : > { %520 = vset.pattern.permute.xlu2 %v586_v0  ;;  %519 = vset.pattern.permute.xlu1 %v586_v0  ;;  %s472_s25 = sshll.u32 %s794_s24, 4  ;;  %s380_s24 = sshll.u32 %s377_s19, 4  ;;  %s381_s24 = int_to_ptr.hbm [resolvable:$true] %s380_s24 }
  0x15   : > { %518 = vset.pattern.permute.xlu0 %v586_v0  ;;  %s666_s28 = scalar_lea.vmem %s784_s1, %s472_s25  ;;  %s690_s5 = scalar_lea.vmem %s783_s0, %s472_s25 }
  0x16   : > { %v220_v1 = vld [vmem:[%s666_s28 + $0x20] sm:$0xff]  ;;  %v218_v2 = vld [vmem:[%s666_s28 + $0x10] sm:$0xff]  ;;  %v221_v4 = vld [vmem:[%s666_s28 + $0x28] sm:$0xff]  ;;  %s536_s25 = sshra.s32 %s381_s24, 4  ;;  %s537_s25 = int_to_ptr.hbm [resolvable:$true] %s536_s25 }
  0x17   : > { %v216_v3 = vld [vmem:[%s666_s28] sm:$0xff]  ;;  %255 = vperm.xlu2 %520, %v220_v1   ;;  %245 = vperm.xlu1 %519, %v218_v2   ;;  %v219_v5 = vld [vmem:[%s666_s28 + $0x18] sm:$0xff]  ;;  %v217_v6 = vld [vmem:[%s666_s28 + $0x8] sm:$0xff]  ;;  %s538_s26 = scalar_lea.hbm %s537_s25, 128  ;;  %p543_p0 = scmp.lt.s32.totalorder %s537_s25, %s786_s3 }
  0x18   : > { %235 = vperm.xlu0 %518, %v216_v3   ;;  %v224_v7 = vld [vmem:[%s666_s28 + $0x40] sm:$0xff]  ;;  %v223_v8 = vld [vmem:[%s666_s28 + $0x38] sm:$0xff]  ;;  %v222_v9 = vld [vmem:[%s666_s28 + $0x30] sm:$0xff]  ;;  %p539_p11 = scmp.ne.s32.totalorder %s537_s25, %s538_s26  ;;  %p544_p1 = scmp.lt.s32.totalorder %s542_s30, %s538_s26 }
  0x19   : > { %v227_v10 = vld [vmem:[%s666_s28 + $0x58] sm:$0xff]  ;;  %v226_v11 = vld [vmem:[%s666_s28 + $0x50] sm:$0xff]  ;;  %v225_v12 = vld [vmem:[%s666_s28 + $0x48] sm:$0xff] }
  0x1a   : > { %v230_v13 = vld [vmem:[%s666_s28 + $0x70] sm:$0xff]  ;;  %v229_v14 = vld [vmem:[%s666_s28 + $0x68] sm:$0xff]  ;;  %v228_v15 = vld [vmem:[%s666_s28 + $0x60] sm:$0xff]  ;;  %p540_p12 = pnand %p539_p11, %p647_p5  ;;  %p545_p2 = por %p544_p1, %p543_p0 }
  0x1b   : > { %v231_v16 = vld [vmem:[%s666_s28 + $0x78] sm:$0xff]  ;;  %v204_v19 = vld [vmem:[%s690_s5 + $0x20] sm:$0xff]  ;;  %v205_v23 = vld [vmem:[%s690_s5 + $0x28] sm:$0xff] }
  0x1c   : > { %v208_v27 = vld [vmem:[%s690_s5 + $0x40] sm:$0xff]  ;;  %v211_v31 = vld [vmem:[%s690_s5 + $0x58] sm:$0xff]  ;;  %v202_v33 = vld [vmem:[%s690_s5 + $0x10] sm:$0xff]  ;;  %p541_p13 = pneg %p540_p12 }
  0x1d   : > { %v200_v37 = vld [vmem:[%s690_s5] sm:$0xff]  ;;  %v214_v43 = vld [vmem:[%s690_s5 + $0x70] sm:$0xff]  ;;  %v203_v45 = vld [vmem:[%s690_s5 + $0x18] sm:$0xff] }
  0x1e   : > { %v201_v49 = vld [vmem:[%s690_s5 + $0x8] sm:$0xff]  ;;  %v207_v55 = vld [vmem:[%s690_s5 + $0x38] sm:$0xff]  ;;  %v206_v58 = vld [vmem:[%s690_s5 + $0x30] sm:$0xff]  ;;  %p546_p3 = pnand %p545_p2, %p541_p13 }
  0x1f   : > { %260 = vperm.xlu2 %520, %v221_v4   ;;  %250 = vperm.xlu1 %519, %v219_v5   ;;  %v210_v63 = vld [vmem:[%s690_s5 + $0x50] sm:$0xff]  ;;  %v209_v2 = vld [vmem:[%s690_s5 + $0x48] sm:$0xff] }
  0x20   : > { %240 = vperm.xlu0 %518, %v217_v6  }
  0x27   : > { %275 = vperm.xlu2 %520, %v224_v7   ;;  %270 = vperm.xlu1 %519, %v223_v8   ;;  %v213_v7 = vld [vmem:[%s690_s5 + $0x68] sm:$0xff] }
  0x28   : > { %265 = vperm.xlu0 %518, %v222_v9  }
  0x2f   : > { %290 = vperm.xlu2 %520, %v227_v10   ;;  %285 = vperm.xlu1 %519, %v226_v11   ;;  %v212_v10 = vld [vmem:[%s690_s5 + $0x60] sm:$0xff] }
  0x30   : > { %280 = vperm.xlu0 %518, %v225_v12  }
  0x37   : > { %305 = vperm.xlu2 %520, %v230_v13   ;;  %300 = vperm.xlu1 %519, %v229_v14  }
  0x38   : > { %295 = vperm.xlu0 %518, %v228_v15   ;;  %v215_v15 = vld [vmem:[%s690_s5 + $0x78] sm:$0xff] }
  0x40   : > { %310 = vperm.xlu0 %518, %v231_v16  }
  0x71   : > { %v256_v18 = vpop.permute.xlu2 %255 }
  0x72   : > { %v320_v20 = vmul.f32 %v695_v17, %v256_v18 }
  0x74   : > { %v336_v21 = vadd.f32 %v320_v20, %v204_v19 }
  0x76   : > { %352 = vst [vmem:[%s701_s9 + $0x20] sm:$0xff] %v336_v21 }
  0x79   : > { %v261_v22 = vpop.permute.xlu2 %260 }
  0x7a   : > { %v321_v24 = vmul.f32 %v695_v17, %v261_v22 }
  0x7c   : > { %v337_v25 = vadd.f32 %v321_v24, %v205_v23 }
  0x7e   : > { %353 = vst [vmem:[%s701_s9 + $0x28] sm:$0xff] %v337_v25 }
  0x81   : > { %v276_v26 = vpop.permute.xlu2 %275 }
  0x82   : > { %v324_v28 = vmul.f32 %v695_v17, %v276_v26 }
  0x84   : > { %v340_v29 = vadd.f32 %v324_v28, %v208_v27 }
  0x86   : > { %356 = vst [vmem:[%s701_s9 + $0x40] sm:$0xff] %v340_v29 }
  0x89   : > { %v291_v30 = vpop.permute.xlu2 %290  ;;  %v246_v32 = vpop.permute.xlu1 %245 }
  0x8a   : > { %v327_v34 = vmul.f32 %v695_v17, %v291_v30  ;;  %v318_v35 = vmul.f32 %v695_v17, %v246_v32  ;;  %v236_v36 = vpop.permute.xlu0 %235 }
  0x8b   : > { %v316_v38 = vmul.f32 %v695_v17, %v236_v36 }
  0x8c   : > { %v343_v39 = vadd.f32 %v327_v34, %v211_v31  ;;  %v334_v40 = vadd.f32 %v318_v35, %v202_v33 }
  0x8d   : > { %v332_v41 = vadd.f32 %v316_v38, %v200_v37 }
  0x8e   : > { %359 = vst [vmem:[%s701_s9 + $0x58] sm:$0xff] %v343_v39 }
  0x8f   : > { %350 = vst [vmem:[%s701_s9 + $0x10] sm:$0xff] %v334_v40 }
  0x90   : > { %348 = vst [vmem:[%s701_s9] sm:$0xff] %v332_v41 }
  0x91   : > { %v306_v42 = vpop.permute.xlu2 %305  ;;  %v251_v44 = vpop.permute.xlu1 %250 }
  0x92   : > { %v330_v46 = vmul.f32 %v695_v17, %v306_v42  ;;  %v319_v47 = vmul.f32 %v695_v17, %v251_v44  ;;  %v241_v48 = vpop.permute.xlu0 %240 }
  0x93   : > { %v317_v50 = vmul.f32 %v695_v17, %v241_v48 }
  0x94   : > { %v346_v51 = vadd.f32 %v330_v46, %v214_v43  ;;  %v335_v52 = vadd.f32 %v319_v47, %v203_v45 }
  0x95   : > { %v333_v53 = vadd.f32 %v317_v50, %v201_v49 }
  0x96   : > { %362 = vst [vmem:[%s701_s9 + $0x70] sm:$0xff] %v346_v51 }
  0x97   : > { %351 = vst [vmem:[%s701_s9 + $0x18] sm:$0xff] %v335_v52 }
  0x98   : > { %349 = vst [vmem:[%s701_s9 + $0x8] sm:$0xff] %v333_v53 }
  0x99   : > { %v271_v54 = vpop.permute.xlu1 %270 }
  0x9a   : > { %v323_v56 = vmul.f32 %v695_v17, %v271_v54  ;;  %v266_v57 = vpop.permute.xlu0 %265 }
  0x9b   : > { %v322_v59 = vmul.f32 %v695_v17, %v266_v57 }
  0x9c   : > { %v339_v60 = vadd.f32 %v323_v56, %v207_v55 }
  0x9d   : > { %v338_v61 = vadd.f32 %v322_v59, %v206_v58 }
  0x9e   : > { %355 = vst [vmem:[%s701_s9 + $0x38] sm:$0xff] %v339_v60 }
  0x9f   : > { %354 = vst [vmem:[%s701_s9 + $0x30] sm:$0xff] %v338_v61 }
  0xa1   : > { %v286_v62 = vpop.permute.xlu1 %285 }
  0xa2   : > { %v326_v0 = vmul.f32 %v695_v17, %v286_v62  ;;  %v281_v1 = vpop.permute.xlu0 %280 }
  0xa3   : > { %v325_v3 = vmul.f32 %v695_v17, %v281_v1 }
  0xa4   : > { %v342_v4 = vadd.f32 %v326_v0, %v210_v63 }
  0xa5   : > { %v341_v5 = vadd.f32 %v325_v3, %v209_v2 }
  0xa6   : > { %358 = vst [vmem:[%s701_s9 + $0x50] sm:$0xff] %v342_v4 }
  0xa7   : > { %357 = vst [vmem:[%s701_s9 + $0x48] sm:$0xff] %v341_v5 }
  0xa9   : > { %v301_v6 = vpop.permute.xlu1 %300 }
  0xaa   : > { %v329_v8 = vmul.f32 %v695_v17, %v301_v6  ;;  %v296_v9 = vpop.permute.xlu0 %295 }
  0xab   : > { %v328_v11 = vmul.f32 %v695_v17, %v296_v9 }
  0xac   : > { %v345_v12 = vadd.f32 %v329_v8, %v213_v7 }
  0xad   : > { %v344_v13 = vadd.f32 %v328_v11, %v212_v10 }
  0xae   : > { %361 = vst [vmem:[%s701_s9 + $0x68] sm:$0xff] %v345_v12 }
  0xaf   : > { %360 = vst [vmem:[%s701_s9 + $0x60] sm:$0xff] %v344_v13 }
  0xb2   : > { %v311_v14 = vpop.permute.xlu0 %310 }
  0xb3   : > { %v331_v16 = vmul.f32 %v695_v17, %v311_v14 }
  0xb5   : > { %v347_v18 = vadd.f32 %v331_v16, %v215_v15 }
  0xb7   : > { %363 = vst [vmem:[%s701_s9 + $0x78] sm:$0xff] %v347_v18 }
  0xb8   : > { %549 = shalt.err (!%p546_p3)
}
  0xb9   : > { %s587_s29 = smov 128   ;;  %s588_s6 = smov 8  }
  0xba   : > { %476 = dma.vmem_to_hbm [thread:$0]  (%p647_p5), %s379_s20, 2048, %s381_s24, %s365_s16, %s587_s29, %s587_s29, %s588_s6  }
  0xbb PF: > { %p482_p4 = scmp.ge.s32.totalorder %s584_s15, 2  ;;  %s395_s7 = sand.u32 1, %s572_s12  }
  0xbc   : > { %s396_s8 = scalar_lea.sflag [#allocation3], %s395_s7 }
  0xbd   : > { %p479_p7 = pnand %p482_p4, %p651_p6 }
  0xbf   : > { %p480_p8 = pneg %p479_p7 }
  0xc1   : > { %567 = dma.done.wait (%p480_p8), %s396_s8, 2048  }
  0xc2   : > { %569 = vsyncadd (%p480_p8), %s396_s8, 4294965248  ;;  %p13_p9 = scmp.ge.s32.totalorder %s634_s18, 4   ;;  %s789_s12 = smov %s576_s13 }
  0xc3   : > { %s790_s13 = smov %s580_s14  ;;  %s791_s14 = smov %s645_s21 }
  0xc4   : > { %s792_s15 = smov %s634_s18  ;;  %15 = sbr.rel (!%p13_p9) target bundleno = 3 (0x3), region = 70 }
  0xc9   :  { %402 = vsyncpa [#allocation3], 1 }
  0xca   :  { %404 = vsyncpa [#allocation3 + $0x1], 1 }

</bundles_post_ra>
